<compile_context>
chip_gen: v6e
topology: v6e:2x2x1
jax: 0.10.0
libtpu: 0.0.40
codegen_flags: <defaults>
</compile_context>

<pallas_src>
import functools

import jax
import jax.numpy as jnp
from jax.experimental import pallas as pl
from jax.experimental.pallas import tpu as pltpu


def _round_up(a: int, b: int) -> int:
    return ((a + b - 1) // b) * b


def _oral_activity_kernel(params_ref, x_ref, o_ref):
    # params_ref: SMEM (memory + 1,) f32 = [w_eff_0 .. w_eff_{m-1}, c]
    # x_ref:      VMEM (memory, lanes)  -- batch along lanes (lane-dense)
    # o_ref:      VMEM (1, lanes)
    m, _ = x_ref.shape
    x = x_ref[...]                                   # (m, lanes) f32
    # Start the FMA chain from the folded bias; statically unrolled (m == 5),
    # each step is scalar-broadcast * (1, lanes) slice on the VPU.
    acc = params_ref[m] + params_ref[0] * x[0:1, :]  # (1, lanes)
    for d in range(1, m):
        acc = acc + params_ref[d] * x[d:d + 1, :]
    # Sigmoid: exp goes to the EUP; one divide per output vreg (mem-bound,
    # fully hidden under the input DMA). Exact divide keeps 1e-5 accuracy.
    o_ref[...] = (1.0 / (1.0 + jnp.exp(-acc))).astype(o_ref.dtype)


@functools.partial(jax.jit, static_argnames=("block_lanes",))
def oral_activity_forward(past_sounds, w1, b1, w2, b2, *, block_lanes=32768):
    """Pallas forward for oralActivity.

    past_sounds: (N, memory) f32
    w1: (memory+1, memory), b1: (memory+1,)   -- PyTorch Linear layout
    w2: (1, memory+1),      b2: (1,)
    Returns (sigmoid_out (N, 1), past_sounds), matching the PyTorch module.
    """
    n, m = past_sounds.shape

    # Fold the two Linears into one affine map (cheap wrapper-side math):
    #   y = (x @ W1^T + b1) @ W2^T + b2 = x @ (W2 @ W1)^T + (W2 @ b1 + b2)
    w_eff = (w2 @ w1).reshape(m).astype(jnp.float32)           # (m,)
    c = (w2 @ b1 + b2).reshape(1).astype(jnp.float32)          # (1,)
    params = jnp.concatenate([w_eff, c])                       # (m + 1,)

    # Lane-dense layout: batch along lanes, features along sublanes.
    lanes = min(block_lanes, _round_up(n, 128))                # multiple of 128
    n_pad = _round_up(n, lanes)
    xt = jnp.zeros((m, n_pad), jnp.float32).at[:, :n].set(
        past_sounds.astype(jnp.float32).T)

    out = pl.pallas_call(
        _oral_activity_kernel,
        out_shape=jax.ShapeDtypeStruct((1, n_pad), jnp.float32),
        grid_spec=pltpu.PrefetchScalarGridSpec(
            num_scalar_prefetch=1,                             # params -> SMEM
            grid=(n_pad // lanes,),
            in_specs=[pl.BlockSpec((m, lanes), lambda i, params: (0, i))],
            out_specs=pl.BlockSpec((1, lanes), lambda i, params: (0, i)),
        ),
        compiler_params=pltpu.CompilerParams(
            dimension_semantics=("parallel",),                 # v7x: 2 TCs/chip
        ),
    )(params, xt)

    y = out[0, :n].reshape(n, 1)
    return y, past_sounds


def reference_forward(past_sounds, w1, b1, w2, b2):
    h = past_sounds @ w1.T + b1
    y = h @ w2.T + b2
    return jax.nn.sigmoid(y), past_sounds


if __name__ == "__main__":
    memory = 5
    batch = 8

    key = jax.random.PRNGKey(0)
    k_x, k_b1, k_b2 = jax.random.split(key, 3)

    past_sounds = jax.random.normal(k_x, (batch, memory), jnp.float32)

    # Match the PyTorch module: weights initialized to ones; biases use the
    # default Linear init uniform(-1/sqrt(fan_in), 1/sqrt(fan_in)).
    w1 = jnp.ones((memory + 1, memory), jnp.float32)
    bound1 = 1.0 / (memory ** 0.5)
    b1 = jax.random.uniform(k_b1, (memory + 1,), jnp.float32, -bound1, bound1)
    w2 = jnp.ones((1, memory + 1), jnp.float32)
    bound2 = 1.0 / ((memory + 1) ** 0.5)
    b2 = jax.random.uniform(k_b2, (1,), jnp.float32, -bound2, bound2)

    y, echoed = oral_activity_forward(past_sounds, w1, b1, w2, b2)
    y = jax.block_until_ready(y)

    y_ref, _ = reference_forward(past_sounds, w1, b1, w2, b2)
    assert y.shape == (batch, 1), y.shape
    assert jnp.allclose(y, y_ref, atol=1e-5, rtol=1e-5), (
        f"max abs err {jnp.max(jnp.abs(y - y_ref))}")
    assert jnp.array_equal(echoed, past_sounds)
    print("KERNEL_OK")
</pallas_src>

<mosaic_0001>
module attributes {stable_mosaic.version = 11 : i64} {
  func.func @_oral_activity_kernel(%arg0: i32, %arg1: memref<6xf32, #tpu.memory_space<smem>>, %arg2: memref<5x128xf32, #tpu.memory_space<vmem>>, %arg3: memref<1x128xf32, #tpu.memory_space<vmem>>) attributes {dimension_semantics = [#tpu.dimension_semantics<parallel>], iteration_bounds = array<i64: 1>, scalar_prefetch = 1 : i64, scratch_operands = 0 : i64, tpu.core_type = #tpu.core_type<tc>, window_params = [{transform_indices = @transform_0, window_bounds = array<i64: 5, 128>}, {transform_indices = @transform_1, window_bounds = array<i64: 1, 128>}]} {
    %c0 = arith.constant 0 : index
    %c0_0 = arith.constant 0 : index
    %0 = vector.load %arg2[%c0, %c0_0] : memref<5x128xf32, #tpu.memory_space<vmem>>, vector<5x128xf32>
    %c5 = arith.constant 5 : index
    %1 = memref.load %arg1[%c5] : memref<6xf32, #tpu.memory_space<smem>>
    %c0_1 = arith.constant 0 : index
    %2 = memref.load %arg1[%c0_1] : memref<6xf32, #tpu.memory_space<smem>>
    %3 = vector.extract_strided_slice %0 {offsets = [0, 0], sizes = [1, 128], strides = [1, 1]} : vector<5x128xf32> to vector<1x128xf32>
    %4 = vector.broadcast %2 : f32 to vector<1x128xf32>
    %5 = arith.mulf %4, %3 : vector<1x128xf32>
    %6 = vector.broadcast %1 : f32 to vector<1x128xf32>
    %7 = arith.addf %6, %5 : vector<1x128xf32>
    %c1 = arith.constant 1 : index
    %8 = memref.load %arg1[%c1] : memref<6xf32, #tpu.memory_space<smem>>
    %9 = vector.extract_strided_slice %0 {offsets = [1, 0], sizes = [1, 128], strides = [1, 1]} : vector<5x128xf32> to vector<1x128xf32>
    %10 = vector.broadcast %8 : f32 to vector<1x128xf32>
    %11 = arith.mulf %10, %9 : vector<1x128xf32>
    %12 = arith.addf %7, %11 : vector<1x128xf32>
    %c2 = arith.constant 2 : index
    %13 = memref.load %arg1[%c2] : memref<6xf32, #tpu.memory_space<smem>>
    %14 = vector.extract_strided_slice %0 {offsets = [2, 0], sizes = [1, 128], strides = [1, 1]} : vector<5x128xf32> to vector<1x128xf32>
    %15 = vector.broadcast %13 : f32 to vector<1x128xf32>
    %16 = arith.mulf %15, %14 : vector<1x128xf32>
    %17 = arith.addf %12, %16 : vector<1x128xf32>
    %c3 = arith.constant 3 : index
    %18 = memref.load %arg1[%c3] : memref<6xf32, #tpu.memory_space<smem>>
    %19 = vector.extract_strided_slice %0 {offsets = [3, 0], sizes = [1, 128], strides = [1, 1]} : vector<5x128xf32> to vector<1x128xf32>
    %20 = vector.broadcast %18 : f32 to vector<1x128xf32>
    %21 = arith.mulf %20, %19 : vector<1x128xf32>
    %22 = arith.addf %17, %21 : vector<1x128xf32>
    %c4 = arith.constant 4 : index
    %23 = memref.load %arg1[%c4] : memref<6xf32, #tpu.memory_space<smem>>
    %24 = vector.extract_strided_slice %0 {offsets = [4, 0], sizes = [1, 128], strides = [1, 1]} : vector<5x128xf32> to vector<1x128xf32>
    %25 = vector.broadcast %23 : f32 to vector<1x128xf32>
    %26 = arith.mulf %25, %24 : vector<1x128xf32>
    %27 = arith.addf %22, %26 : vector<1x128xf32>
    %cst = arith.constant 0.000000e+00 : f32
    %28 = vector.broadcast %cst : f32 to vector<1x128xf32>
    %29 = arith.subf %28, %27 : vector<1x128xf32>
    %30 = math.exp %29 : vector<1x128xf32>
    %cst_2 = arith.constant 1.000000e+00 : f32
    %31 = vector.broadcast %cst_2 : f32 to vector<1x128xf32>
    %32 = arith.addf %31, %30 : vector<1x128xf32>
    %cst_3 = arith.constant 1.000000e+00 : f32
    %33 = vector.broadcast %cst_3 : f32 to vector<1x128xf32>
    %34 = arith.divf %33, %32 : vector<1x128xf32>
    %c0_4 = arith.constant 0 : index
    %c0_5 = arith.constant 0 : index
    %35 = vector.load %arg3[%c0_4, %c0_5] : memref<1x128xf32, #tpu.memory_space<vmem>>, vector<1x128xf32>
    tpu.vector_store %arg3[%c0_4, %c0_5], %34 {strides = array<i32>} : memref<1x128xf32, #tpu.memory_space<vmem>>, vector<1x128xf32>,
    return
  }
  func.func @transform_0(%arg0: i32, %arg1: memref<6xf32, #tpu.memory_space<smem>>) -> (i32, i32) {
    %c0_i32 = arith.constant 0 : i32
    %c0_i32_0 = arith.constant 0 : i32
    return %c0_i32, %arg0 : i32, i32
  }
  func.func @transform_1(%arg0: i32, %arg1: memref<6xf32, #tpu.memory_space<smem>>) -> (i32, i32) {
    %c0_i32 = arith.constant 0 : i32
    %c0_i32_0 = arith.constant 0 : i32
    return %c0_i32, %arg0 : i32, i32
  }
}

</mosaic_0001>

<bundles_post_ra>
// kernel: oral_activity_forward.1
= control target key start
LH: loop header
LB: loop body
LE: loop exit
PB: predicated region body
PF: predicated region fallthrough
CT: control target
= control target key end

     0   :  { %s110_s0 = inlined_call_operand.vmem [shape: f32[6], index: 0, kind: input, shape index: {}]   ;;  %s111_s1 = inlined_call_operand.vmem [shape: f32[5,128], index: 1, kind: input, shape index: {}]   ;;  %s112_s2 = inlined_call_operand.vmem [shape: f32[1,128], index: 2, kind: output, shape index: {}]  }
   0x1   :  { %s7_s11 = sshll.u32 %s110_s0, 4  ;;  %s8_s11 = int_to_ptr.vmem [resolvable:$true] %s7_s11 }
   0x2   :  { %s71_s12 = scalar_lea.vmem %s8_s11, 16  ;;  %p76_p1 = scmp.lt.s32.totalorder %s8_s11, %s8_s11 }
   0x3   :  { %p72_p0 = scmp.ne.s32.totalorder %s8_s11, %s71_s12  ;;  %p77_p2 = scmp.lt.s32.totalorder %s71_s12, %s71_s12 }
   0x5   :  { %p78_p3 = por %p77_p2, %p76_p1 }
   0x7   :  { %p79_p4 = pnand %p78_p3, %p72_p0 }
   0x9   :  { %82 = shalt.err (!%p79_p4)  }
   0xa   :  { %s85_s13 = smov [#allocation3]  }
   0xb   :  { %10 = dma.vmem_to_smem %s8_s11, 16, %s85_s13, [#allocation2] }
   0xc   :  { %83 = dma.done.wait [#allocation2], 16 }
   0xd   :  { %84 = vsyncadd [#allocation2], 4294967280 }
   0xe   :  { %12 = sfence }
   0xf   :  { %s61_s14 = sld [smem:[#allocation3 + $0x5]]  ;;  %v15_v0 = vld [vmem:[%s111_s1] sm:$0x1f] }
  0x10   :  { %s17_s15 = sld [smem:[#allocation3]] }
  0x11   :  { %s62_s16 = sld [smem:[#allocation3 + $0x1]] }
  0x12   :  { %s63_s17 = sld [smem:[#allocation3 + $0x2]] }
  0x13   :  { %s64_s18 = sld [smem:[#allocation3 + $0x3]] }
  0x14   :  { %s65_s20 = sld [smem:[#allocation3 + $0x4]] }
  0x15   :  { %v20_v2 = vstv %s61_s14 }
  0x16   :  { %v18_v1 = vstv %s17_s15 }
  0x17   :  { %v19_v3 = vmul.f32 %v18_v1, %v15_v0  ;;  %v23_v4 = vstv %s62_s16 }
  0x18   :  { %v24_v5 = vmul.f32 %v23_v4, %v15_v0  ;;  %v30_v6 = vstv %s63_s17 }
  0x19   :  { %v21_v7 = vadd.f32 %v20_v2, %v19_v3  ;;  %v31_v8 = vmul.f32 %v30_v6, %v15_v0  ;;  %v37_v9 = vstv %s64_s18 }
  0x1a   :  { %v26_v10 = vrot.slane %v24_v5, 1  ;;  %v38_v11 = vmul.f32 %v37_v9, %v15_v0  ;;  %v44_v12 = vstv %s65_s20 }
  0x1b   :  { %v33_v13 = vrot.slane %v31_v8, 2  ;;  %v45_v14 = vmul.f32 %v44_v12, %v15_v0 }
  0x1c   :  { %v28_v15 = vadd.f32 %v26_v10, %v21_v7  ;;  %v40_v16 = vrot.slane %v38_v11, 3 }
  0x1d   :  { %v47_v18 = vrot.slane %v45_v14, 4 }
  0x1e   :  { %v35_v17 = vadd.f32 %v33_v13, %v28_v15 }
  0x20   :  { %v42_v19 = vadd.f32 %v40_v16, %v35_v17 }
  0x22   :  { %v49_v20 = vadd.f32 %v47_v18, %v42_v19 }
  0x24   :  { %v50_v21 = vsub.f32 0.0, %v49_v20 }
  0x26   :  { %v51_v22 = vmul.f32 1.442695, %v50_v21 }
  0x28   :  { %67 = vpow2.f32 %v51_v22 }
  0x35   :  { %v68_v23 = vpop.eup %67 }
  0x36   :  { %v53_v24 = vadd.f32 1.0, %v68_v23 }
  0x38   :  { %69 = vrcp.f32 %v53_v24 }
  0x45   :  { %v70_v25 = vpop.eup %69 }
  0x46   :  { %56 = vst [vmem:[%s112_s2] sm:$0x1] %v70_v25 }

</bundles_post_ra>
